<compile_context>
chip_gen: v5e
topology: v5e:2x2
jax: 0.10.0
libtpu: 0.0.40
codegen_flags: <defaults>
</compile_context>

<pallas_src>
import math

import jax
import jax.numpy as jnp
from jax.experimental import pallas as pl
from jax.experimental.pallas import tpu as pltpu


def _drop_path_kernel(scale_ref, x_ref, o_ref):
    """scale_ref: f32 (TB,1,1) VMEM; x_ref/o_ref: (TB, TR, C) VMEM tiles."""
    o_ref[...] = (x_ref[...] * scale_ref[...]).astype(o_ref.dtype)


def _choose_tiling(B, F, itemsize, target_bytes=4 << 20):
    """Pick lane-dense per-sample layout (R, C) and block tile (TB, TR)."""
    # Lane-dense C: largest multiple of 128 (<= 1024) dividing F (F % 128 == 0).
    C = 128
    while C * 2 <= 1024 and F % (C * 2) == 0:
        C *= 2
    R = F // C
    # dtype-aware sublane packing: 8 for f32, 16 for bf16/f16, 32 for int8/fp8.
    sub = 8 * max(1, 4 // itemsize)
    sample_bytes = F * itemsize

    if sample_bytes >= target_bytes:
        TB = 1
        rows = max(1, target_bytes // (C * itemsize))
        TR = R if rows >= R else max(sub, (rows // sub) * sub)
    else:
        TR = R
        TB = min(B, max(1, target_bytes // max(1, sample_bytes)))

    def steps(tb, tr):
        return -(-B // tb) * -(-R // tr)

    # v7x megacore: keep >= 4 grid steps when possible (shrink TB, then TR,
    # but never drop below ~1 MiB blocks).
    while TB > 1 and steps(TB, TR) < 4:
        TB = max(1, TB // 2)
    while (TB == 1 and TR > sub and steps(TB, TR) < 4
           and TR * C * itemsize > (1 << 20)):
        TR = max(sub, ((TR // 2) // sub) * sub)

    return R, C, TR, TB


def drop_path(x, drop_prob, training, key=None, seed=0):
    """Pallas DropPath. x: (B, ...). Returns same shape/dtype."""
    if (not training) or (drop_prob is None) or float(drop_prob) == 0.0:
        return x

    keep_prob = 1.0 - float(drop_prob)
    inv_keep = (1.0 / keep_prob) if keep_prob > 0.0 else 0.0

    orig_shape = x.shape
    B = int(orig_shape[0])
    F = int(math.prod(orig_shape[1:])) if len(orig_shape) > 1 else 1
    itemsize = jnp.dtype(x.dtype).itemsize

    # Per-sample keep decision (distribution-equivalent to timm's
    # floor(keep_prob + U); not bit-identical to the PyTorch RNG).
    if key is None:
        key = jax.random.PRNGKey(seed)
    u = jax.random.uniform(key, (B,), dtype=jnp.float32)
    scales = jnp.where(u < keep_prob, jnp.float32(inv_keep), jnp.float32(0.0))

    # Degenerate shapes: tiny fully-masked Pallas tiles aren't worth it.
    if B == 0 or F < 128:
        s = scales.reshape((B,) + (1,) * max(0, x.ndim - 1))
        return (x.astype(jnp.float32) * s).astype(x.dtype)

    # Lane-dense layout: pad flattened features up to a multiple of 128 so
    # every store is an unmasked, lane-dense vst; slice the pad off at the end.
    x2 = x.reshape(B, F)
    Fp = ((F + 127) // 128) * 128
    if Fp != F:
        x2 = jnp.pad(x2, ((0, 0), (0, Fp - F)))

    R, C, TR, TB = _choose_tiling(B, Fp, itemsize)
    x3 = x2.reshape(B, R, C)
    scales3 = scales.reshape(B, 1, 1)

    grid = (pl.cdiv(B, TB), pl.cdiv(R, TR))
    block_bytes = TB * TR * C * itemsize

    # Generation-aware VMEM budget (v7x has 64 MiB physical, not 128 MiB).
    phys_vmem = 64 << 20
    try:
        info = pltpu.get_tpu_info()
        phys_vmem = int(getattr(info, "vmem_capacity_bytes", phys_vmem))
    except Exception:
        pass
    vmem_limit = int(min(int(phys_vmem * 0.75), 48 << 20,
                         max(16 << 20, 8 * block_bytes)))

    cost = pl.CostEstimate(
        flops=B * Fp,
        transcendentals=0,
        bytes_accessed=2 * B * Fp * itemsize + B * 4,
    )

    out = pl.pallas_call(
        _drop_path_kernel,
        out_shape=jax.ShapeDtypeStruct((B, R, C), x.dtype),
        grid_spec=pltpu.PrefetchScalarGridSpec(
            num_scalar_prefetch=0,
            grid=grid,
            in_specs=[
                pl.BlockSpec((TB, 1, 1), lambda b, r: (b, 0, 0)),
                pl.BlockSpec((TB, TR, C), lambda b, r: (b, r, 0)),
            ],
            out_specs=pl.BlockSpec((TB, TR, C), lambda b, r: (b, r, 0)),
        ),
        compiler_params=pltpu.CompilerParams(
            dimension_semantics=("parallel", "parallel"),
            vmem_limit_bytes=vmem_limit,
        ),
        cost_estimate=cost,
    )(scales3, x3)

    out = out.reshape(B, Fp)
    if Fp != F:
        out = out[:, :F]
    return out.reshape(orig_shape)


class DropPath:
    """Mirror of the PyTorch module (no parameters)."""

    def __init__(self, drop_prob=None):
        self.drop_prob = drop_prob
        self.training = True

    def __call__(self, x, seed=0, key=None):
        return drop_path(x, self.drop_prob, self.training, key=key, seed=seed)


def _check_per_sample(y, x, keep_prob, rtol=1e-5, atol=1e-6):
    for b in range(x.shape[0]):
        yb = jnp.asarray(y[b], jnp.float32)
        xb = jnp.asarray(x[b], jnp.float32)
        zero = bool(jnp.all(yb == 0.0))
        scaled = bool(jnp.allclose(yb, xb / keep_prob, rtol=rtol, atol=atol))
        assert zero or scaled, "per-sample mask semantics violated"


if __name__ == "__main__":
    key = jax.random.PRNGKey(0)
    k1, k2, k3 = jax.random.split(key, 3)

    # --- f32 ViT-token-like tensor (F = 256, already 128-multiple) ---
    B, N, D = 2, 8, 32
    x = jax.random.normal(k1, (B, N, D), dtype=jnp.float32)

    module = DropPath(drop_prob=0.25)
    module.training = True
    y = jax.block_until_ready(module(x, seed=123))
    assert y.shape == x.shape and y.dtype == x.dtype
    _check_per_sample(y, x, keep_prob=0.75)

    # --- non-128-multiple feature size exercises the lane-padding path ---
    x_odd = jax.random.normal(k2, (2, 8, 20), dtype=jnp.float32)
    y_odd = jax.block_until_ready(module(x_odd, seed=7))
    assert y_odd.shape == x_odd.shape and y_odd.dtype == x_odd.dtype
    _check_per_sample(y_odd, x_odd, keep_prob=0.75)

    # --- bf16 path (multi-sample blocks, dtype-aware sublane rounding) ---
    x_bf = jax.random.normal(k3, (4, 16, 64), dtype=jnp.float32).astype(jnp.bfloat16)
    y_bf = jax.block_until_ready(module(x_bf, seed=42))
    assert y_bf.shape == x_bf.shape and y_bf.dtype == x_bf.dtype
    _check_per_sample(y_bf, x_bf, keep_prob=0.75, rtol=2e-2, atol=2e-2)

    # --- eval mode / drop_prob=0: identity ---
    module.training = False
    y_eval = jax.block_until_ready(module(x))
    assert bool(jnp.allclose(y_eval, x))

    print("KERNEL_OK")
</pallas_src>

<mosaic_0001>
module attributes {stable_mosaic.version = 11 : i64} {
  func.func @_drop_path_kernel(%arg0: i32, %arg1: i32, %arg2: memref<1x1x1xf32, #tpu.memory_space<vmem>>, %arg3: memref<1x1x256xf32, #tpu.memory_space<vmem>>, %arg4: memref<1x1x256xf32, #tpu.memory_space<vmem>>) attributes {dimension_semantics = [#tpu.dimension_semantics<parallel>, #tpu.dimension_semantics<parallel>], iteration_bounds = array<i64: 2, 1>, scalar_prefetch = 0 : i64, scratch_operands = 0 : i64, tpu.core_type = #tpu.core_type<tc>, window_params = [{transform_indices = @transform_0, window_bounds = array<i64: 1, 1, 1>}, {transform_indices = @transform_1, window_bounds = array<i64: 1, 1, 256>}, {transform_indices = @transform_2, window_bounds = array<i64: 1, 1, 256>}]} {
    %c0 = arith.constant 0 : index
    %c0_0 = arith.constant 0 : index
    %c0_1 = arith.constant 0 : index
    %0 = vector.load %arg3[%c0, %c0_0, %c0_1] : memref<1x1x256xf32, #tpu.memory_space<vmem>>, vector<1x1x256xf32>
    %c0_2 = arith.constant 0 : index
    %c0_3 = arith.constant 0 : index
    %c0_4 = arith.constant 0 : index
    %1 = vector.load %arg2[%c0_2, %c0_3, %c0_4] : memref<1x1x1xf32, #tpu.memory_space<vmem>>, vector<1x1x1xf32>
    %2 = vector.broadcast %1 : vector<1x1x1xf32> to vector<1x1x256xf32>
    %3 = arith.mulf %0, %2 : vector<1x1x256xf32>
    %c0_5 = arith.constant 0 : index
    %c0_6 = arith.constant 0 : index
    %c0_7 = arith.constant 0 : index
    %4 = vector.load %arg4[%c0_5, %c0_6, %c0_7] : memref<1x1x256xf32, #tpu.memory_space<vmem>>, vector<1x1x256xf32>
    tpu.vector_store %arg4[%c0_5, %c0_6, %c0_7], %3 {strides = array<i32>} : memref<1x1x256xf32, #tpu.memory_space<vmem>>, vector<1x1x256xf32>,
    return
  }
  func.func @transform_0(%arg0: i32, %arg1: i32) -> (i32, i32, i32) {
    %c0_i32 = arith.constant 0 : i32
    %c0_i32_0 = arith.constant 0 : i32
    %c0_i32_1 = arith.constant 0 : i32
    return %arg0, %c0_i32, %c0_i32_0 : i32, i32, i32
  }
  func.func @transform_1(%arg0: i32, %arg1: i32) -> (i32, i32, i32) {
    %c0_i32 = arith.constant 0 : i32
    %c0_i32_0 = arith.constant 0 : i32
    return %arg0, %arg1, %c0_i32 : i32, i32, i32
  }
  func.func @transform_2(%arg0: i32, %arg1: i32) -> (i32, i32, i32) {
    %c0_i32 = arith.constant 0 : i32
    %c0_i32_0 = arith.constant 0 : i32
    return %arg0, %arg1, %c0_i32 : i32, i32, i32
  }
}

</mosaic_0001>

<bundles_post_ra>
// kernel: tpu_custom_call.1
= control target key start
LH: loop header
LB: loop body
LE: loop exit
PB: predicated region body
PF: predicated region fallthrough
CT: control target
= control target key end

     0   :  { %7 = vsyncpa [#allocation3], 0  ;;  %s648_s0 = inlined_call_operand.vmem [shape: f32[2,1,1], index: 0, kind: input, shape index: {}]   ;;  %s649_s1 = inlined_call_operand.hbm [shape: f32[2,1,256], index: 1, kind: input, shape index: {}]   ;;  %s650_s2 = inlined_call_operand.hbm [shape: f32[2,1,256], index: 2, kind: output, shape index: {}]  }
   0x1   :  { %9 = vsyncpa [#allocation3 + $0x1], 0 }
   0x2   :  { %10 = vsyncpa [#allocation4], 0 }
   0x3   :  { %12 = vsyncpa [#allocation4 + $0x1], 0  ;;  %s523_s9 = smov 0   ;;  %s525_s10 = smov 0  }
   0x4   :  { %s527_s11 = smov 0   ;;  %s529_s12 = smov 0  }
   0x5   :  { %s531_s13 = smov 0   ;;  %s533_s14 = smov 0  }
   0x6 LB: > { %s316_s15 = sadd.s32 4294967295, %s505_s14   ;;  %s317_s16 = sadd.s32 4294967294, %s505_s14   ;;  %s505_s14 = sphi %s533_s14, %s18_s14   ;;  %s501_s13 = sphi %s531_s13, %s659_s13   ;;  %s497_s12 = sphi %s529_s12, %s658_s12   ;;  %s493_s11 = sphi %s527_s11, %s657_s11   ;;  %s489_s10 = sphi %s525_s10, %s656_s10   ;;  %s485_s9 = sphi %s523_s9, %s655_s9  }
   0x7   : > { %s30_s17 = sadd.s32 1, %s501_s13  ;;  %s65_s18 = sadd.s32 1, %s493_s11 }
   0x8   : > { %p32_p0 = scmp.ge.s32.totalorder %s30_s17, 2  ;;  %p72_p1 = scmp.ne.s32.totalorder %s493_s11, %s489_s10 }
   0x9   : > { %p73_p2 = scmp.eq.s32.totalorder %s505_s14, 0  ;;  %p78_p3 = scmp.ne.s32.totalorder %s489_s10, %s485_s9 }
   0xa   : > { %s661_s17 = smov (%p32_p0, %s30_s17), 0  ;;  %p79_p5 = scmp.eq.s32.totalorder %s316_s15, 0 }
   0xb   : > { %p564_p4 = por %p73_p2, %p72_p1  ;;  %s60_s20 = ssub.s32 %s501_s13, %s661_s17 }
   0xc   : > { %p104_p6 = scmp.eq.s32.totalorder %s316_s15, 1  ;;  %p63_p7 = scmp.eq.s32.totalorder %s60_s20, 0 }
   0xd   : > { %p570_p8 = por %p79_p5, %p78_p3  ;;  %p110_p10 = scmp.eq.s32.totalorder %s317_s16, 1 }
   0xe   : > { %p574_p9 = por %p104_p6, %p72_p1  ;;  %p319_p12 = scmp.ge.s32.totalorder %s505_s14, 2 }
   0xf   : > { %s579_s23 = scalar_select %p63_p7, %s493_s11, %s65_s18  }
  0x10   : > { %p581_p11 = por %p110_p10, %p78_p3  ;;  %p341_p13 = scmp.lt.s32.totalorder %s505_s14, 2 }
  0x11   : > { %s136_s25 = sand.u32 1, %s493_s11   ;;  %s321_s27 = sshll.u32 %s501_s13, 1 }
  0x12   : > { %s320_s26 = sshll.u32 %s136_s25, 1  ;;  %s146_s30 = scalar_lea.hbm %s649_s1, %s321_s27 }
  0x13   : > { %s140_s3 = scalar_lea.vmem [#allocation2], %s320_s26  ;;  %s148_s5 = sshll.u32 %s146_s30, 4  ;;  %s149_s5 = int_to_ptr.hbm [resolvable:$true] %s148_s5 }
  0x14   : > { %s150_s4 = sshll.u32 %s140_s3, 4  ;;  %p334_p0 = pnand %p341_p13, %p564_p4  ;;  %s151_s4 = int_to_ptr.vmem [resolvable:$true] %s150_s4 }
  0x15   : > { %p322_p1 = scmp.ge.s32.totalorder %s505_s14, 1  ;;  %p155_p2 = scmp.lt.s32.totalorder %s505_s14, 3 }
  0x16   : > { %s137_s6 = scalar_lea.sflag [#allocation3], %s136_s25 }
  0x17   : > { %336 = dma.hbm_to_vmem [thread:$0]  (!%p334_p0), %s149_s5, 32, %s151_s4, %s137_s6  }
  0x18   : > { %p156_p3 = pnand %p322_p1, %p155_p2 }
  0x19   : > { %s597_s7 = sand.u32 (!%p156_p3), 1, %s489_s10  }
  0x1a   : > { %159 = sbr.rel (%p156_p3) target bundleno = 160 (0xa0), region = 28  ;;  %s323_s8 = sshll.u32 (!%p156_p3), %s597_s7, 1 }
  0x1b   : > { %s162_s15 = scalar_lea.sflag (!%p156_p3), [#allocation3], %s597_s7  ;;  %s165_s16 = scalar_lea.vmem (!%p156_p3), [#allocation2], %s323_s8 }
  0x1f   : > { %476 = dma.done.wait (%p570_p8), %s162_s15, 32  }
  0x20   : > { %478 = vsyncadd (%p570_p8), %s162_s15, 4294967264  ;;  %p190_p4 = scmp.lt.s32.totalorder %s497_s12, 1  ;;  %v507_v0 = vmov 0   ;;  %s326_s26 = sshll.u32 %s497_s12, 1  ;;  %v202_v2 = vlaneseq  ;;  %v193_v4 = vld [vmem:[%s165_s16] sm:$0x3] }
  0x21   : > { %392 = vset.pattern.permute.xlu0 %v507_v0  ;;  %s220_s21 = scalar_lea.hbm %s650_s2, %s326_s26  ;;  %s189_s29 = scalar_lea.vmem [#allocation5], %s323_s8 }
  0x22   : > { %s191_s18 = scalar_select %p190_p4, %s497_s12, 1  ;;  %vm204_vm0 = vcmp.lt.s32.totalorder %v202_v2, 256 }
  0x23   : > { %s222_s30 = sshll.u32 %s189_s29, 4  ;;  %s224_s3 = sshll.u32 %s220_s21, 4  ;;  %s223_s30 = int_to_ptr.vmem [resolvable:$true] %s222_s30  ;;  %s225_s3 = int_to_ptr.hbm [resolvable:$true] %s224_s3 }
  0x24   : > { %s192_s25 = scalar_lea.vmem %s648_s0, %s191_s18  ;;  %s208_s4 = scalar_lea.sflag [#allocation4], %s597_s7 }
  0x25   : > { %v194_v1 = vld [vmem:[%s192_s25] sm:$0x1]  ;;  %s437_s5 = sshra.s32 %s225_s3, 4  ;;  %s443_s8 = scalar_lea.hbm %s650_s2, 4  ;;  %s438_s5 = int_to_ptr.hbm [resolvable:$true] %s437_s5 }
  0x26   : > { %197 = vperm.xlu0 %392, %v194_v1   ;;  %s439_s12 = scalar_lea.hbm %s438_s5, 2  ;;  %p444_p8 = scmp.lt.s32.totalorder %s438_s5, %s650_s2 }
  0x27   : > { %p440_p5 = scmp.ne.s32.totalorder %s438_s5, %s439_s12  ;;  %p445_p10 = scmp.lt.s32.totalorder %s443_s8, %s439_s12 }
  0x29   : > { %p441_p6 = pnand %p440_p5, %p574_p9  ;;  %p446_p13 = por %p445_p10, %p444_p8 }
  0x2b   : > { %p442_p7 = pneg %p441_p6 }
  0x2d   : > { %p447_p0 = pnand %p446_p13, %p442_p7 }
  0x98   : > { %v198_v3 = vpop.permute.xlu0 %197 }
  0x99   : > { %v200_v5 = vperm.slane %v198_v3, 0 }
  0x9b   : > { %v201_v6 = vmul.f32 %v200_v5, %v193_v4 }
  0x9d   : > { %206 = vst.msk [vmem:[%s189_s29] sm:$0x3] %vm204_vm0, %v201_v6 }
  0x9e   : > { %450 = shalt.err (!%p447_p0)
}
  0x9f   : > { %331 = dma.vmem_to_hbm [thread:$0]  (%p574_p9), %s223_s30, 32, %s225_s3, %s208_s4  }
  0xa0 PF: > { %s236_s7 = sand.u32 1, %s485_s9   ;;  %p338_p1 = pnand %p319_p12, %p581_p11 }
  0xa1   : > { %s237_s19 = scalar_lea.sflag [#allocation4], %s236_s7 }
  0xa2   : > { %p339_p2 = pneg %p338_p1 }
  0xa4   : > { %480 = dma.done.wait (%p339_p2), %s237_s19, 32  }
  0xa5   : > { %482 = vsyncadd (%p339_p2), %s237_s19, 4294967264  ;;  %s18_s14 = sadd.s32 1, %s505_s14   ;;  %s655_s9 = smov %s489_s10 }
  0xa6   : > { %p15_p3 = scmp.ge.s32.totalorder %s18_s14, 4   ;;  %s656_s10 = smov %s493_s11 }
  0xa7   : > { %s657_s11 = smov %s579_s23  ;;  %s658_s12 = smov %s501_s13 }
  0xa8   : > { %s659_s13 = smov %s661_s17  ;;  %17 = sbr.rel (!%p15_p3) target bundleno = 6 (0x6), region = 76 }
  0xad   :  { %243 = vsyncpa [#allocation3], 1 }
  0xae   :  { %245 = vsyncpa [#allocation3 + $0x1], 1 }
  0xaf   :  { %246 = vsyncpa [#allocation4], 1 }
  0xb0   :  { %248 = vsyncpa [#allocation4 + $0x1], 1 }

</bundles_post_ra>
